<compile_context>
chip_gen: v5e
topology: v5e:2x2
jax: 0.10.0
libtpu: 0.0.40
codegen_flags: <defaults>
</compile_context>

<pallas_src>
import jax
import jax.numpy as jnp
from jax.experimental import pallas as pl
from jax.experimental.pallas import tpu as pltpu

D_IN, D_HID, D_OUT = 10, 10, 5
_P_ROWS, _P_COLS = D_HID + D_OUT, D_IN + 1   # packed parameter slab: (15, 11)
_SMALL_BATCH_CUTOFF = 2048                    # below this, plain XLA fusion wins


def _split_model_kernel(p_ref, x_ref, o_ref):
    # p_ref: (15, 11) packed params (VMEM-resident across the grid)
    # x_ref: (10, TN) tile of x^T   (lane-dense batch)
    # o_ref: (5,  TN) tile of y^T   (lane-dense batch, unmasked stores)
    p = p_ref[...]
    w1 = p[0:D_HID, 0:D_IN]                       # (10, 10), PyTorch (out, in) orientation
    b1 = p[0:D_HID, D_IN:D_IN + 1]                # (10, 1) -> broadcasts over lanes
    w2 = p[D_HID:D_HID + D_OUT, 0:D_HID]          # (5, 10)
    b2 = p[D_HID:D_HID + D_OUT, D_IN:D_IN + 1]    # (5, 1)

    # bf16 inputs are upcast in-VMEM (HBM traffic stays bf16); MXU accumulates in f32.
    x = x_ref[...].astype(jnp.float32)
    h = jnp.dot(w1, x, preferred_element_type=jnp.float32) + b1   # net1: Linear(10, 10)
    h = jnp.maximum(h, 0.0)                                       # ReLU on f32 accumulator
    y = jnp.dot(w2, h, preferred_element_type=jnp.float32) + b2   # net2: Linear(10, 5)
    o_ref[...] = y.astype(o_ref.dtype)


def pack_params(w1, b1, w2, b2):
    """Pack PyTorch-orientation params into one (15, 11) f32 slab (single DMA per call)."""
    p = jnp.zeros((_P_ROWS, _P_COLS), jnp.float32)
    p = p.at[0:D_HID, 0:D_IN].set(w1.astype(jnp.float32))
    p = p.at[0:D_HID, D_IN].set(b1.astype(jnp.float32))
    p = p.at[D_HID:, 0:D_HID].set(w2.astype(jnp.float32))
    p = p.at[D_HID:, D_IN].set(b2.astype(jnp.float32))
    return p


def _dense_forward_t(x_t, params):
    """Plain-jnp fallback (small batches) on the transposed layout."""
    w1 = params[0:D_HID, 0:D_IN]
    b1 = params[0:D_HID, D_IN:D_IN + 1]
    w2 = params[D_HID:, 0:D_HID]
    b2 = params[D_HID:, D_IN:D_IN + 1]
    h = jnp.maximum(jnp.dot(w1, x_t.astype(jnp.float32)) + b1, 0.0)
    return (jnp.dot(w2, h) + b2).astype(x_t.dtype)


def split_model_forward_t(x_t, params, *, block_b=32768, use_pallas=None):
    """Transposed-layout forward: x_t (10, B) -> (5, B).  Preferred (lane-dense) entry point."""
    d, B = x_t.shape
    assert d == D_IN, x_t.shape
    if use_pallas is None:
        use_pallas = B >= _SMALL_BATCH_CUTOFF
    if not use_pallas:
        return _dense_forward_t(x_t, params)

    # Lane tiles must be 128-multiples unless they span the full batch extent.
    block_b = max(128, (block_b // 128) * 128)
    tn = B if B <= block_b else block_b
    grid = (pl.cdiv(B, tn),)                 # ragged last block handled by Pallas (masked writes)

    itemsize = jnp.dtype(x_t.dtype).itemsize
    flops = 2 * B * (D_IN * D_HID + D_HID * D_OUT) + B * (2 * D_HID + D_OUT)
    bytes_accessed = B * (D_IN + D_OUT) * itemsize + _P_ROWS * _P_COLS * 4

    return pl.pallas_call(
        _split_model_kernel,
        out_shape=jax.ShapeDtypeStruct((D_OUT, B), x_t.dtype),
        grid=grid,
        in_specs=[
            pl.BlockSpec((_P_ROWS, _P_COLS), lambda i: (0, 0)),   # VMEM-resident param slab
            pl.BlockSpec((D_IN, tn), lambda i: (0, i)),           # lane-dense x^T stream
        ],
        out_specs=pl.BlockSpec((D_OUT, tn), lambda i: (0, i)),    # lane-dense y^T stream
        compiler_params=pltpu.CompilerParams(
            dimension_semantics=("parallel",),                     # megacore-split batch on v7x
        ),
        cost_estimate=pl.CostEstimate(
            flops=flops, transcendentals=0, bytes_accessed=bytes_accessed
        ),
    )(params, x_t)


def split_model_forward(x, params, *, block_b=32768, use_pallas=None):
    """PyTorch-interface forward: x (B, 10) -> (B, 5).

    Pays two XLA transposes around the lane-dense kernel; producers/consumers that can
    work in the transposed layout should call split_model_forward_t directly.
    """
    return split_model_forward_t(x.T, params, block_b=block_b, use_pallas=use_pallas).T


def init_params(key):
    """torch.nn.Linear-style U(-1/sqrt(fan_in), +1/sqrt(fan_in)) init, (out, in) storage."""
    k1, k2, k3, k4 = jax.random.split(key, 4)
    bound = 1.0 / jnp.sqrt(10.0)
    w1 = jax.random.uniform(k1, (D_HID, D_IN), jnp.float32, -bound, bound)
    b1 = jax.random.uniform(k2, (D_HID,), jnp.float32, -bound, bound)
    w2 = jax.random.uniform(k3, (D_OUT, D_HID), jnp.float32, -bound, bound)
    b2 = jax.random.uniform(k4, (D_OUT,), jnp.float32, -bound, bound)
    return w1, b1, w2, b2


def reference_forward(x, w1, b1, w2, b2):
    h = jnp.maximum(x @ w1.T + b1, 0.0)   # net1 + ReLU (PyTorch semantics)
    return h @ w2.T + b2                  # net2


if __name__ == "__main__":
    key = jax.random.PRNGKey(0)
    kx1, kx2, kp = jax.random.split(key, 3)
    w1, b1, w2, b2 = init_params(kp)
    params = pack_params(w1, b1, w2, b2)

    # Case 1: tiny batch matching the original module's scale (single grid step).
    B1 = 8
    x1 = jax.random.normal(kx1, (B1, D_IN), jnp.float32)
    out1 = jax.block_until_ready(split_model_forward(x1, params, use_pallas=True))
    ref1 = reference_forward(x1, w1, b1, w2, b2)
    assert out1.shape == (B1, D_OUT), out1.shape
    assert jnp.allclose(out1, ref1, atol=1e-5, rtol=1e-5), "mismatch vs reference (B=8)"

    # Case 2: multi-step grid with a ragged last block (no wrapper pad/slice passes).
    B2 = 300
    x2 = jax.random.normal(kx2, (B2, D_IN), jnp.float32)
    out2 = jax.block_until_ready(
        split_model_forward(x2, params, block_b=128, use_pallas=True)
    )
    ref2 = reference_forward(x2, w1, b1, w2, b2)
    assert out2.shape == (B2, D_OUT), out2.shape
    assert jnp.allclose(out2, ref2, atol=1e-5, rtol=1e-5), "mismatch vs reference (B=300)"

    # Case 3: bf16 activation path (halved streaming HBM traffic, f32 accumulation).
    x3 = x2.astype(jnp.bfloat16)
    out3 = jax.block_until_ready(
        split_model_forward(x3, params, block_b=128, use_pallas=True)
    )
    assert out3.dtype == jnp.bfloat16, out3.dtype
    ref3 = reference_forward(x3.astype(jnp.float32), w1, b1, w2, b2)
    assert jnp.allclose(out3.astype(jnp.float32), ref3, atol=5e-2, rtol=5e-2), "bf16 mismatch"

    # Case 4: small-batch auto fast path (bypasses pallas_call below the cutoff).
    out4 = jax.block_until_ready(split_model_forward(x1, params))
    assert jnp.allclose(out4, ref1, atol=1e-5, rtol=1e-5), "fast-path mismatch"

    print("KERNEL_OK")
</pallas_src>

<mosaic_0001>
module attributes {stable_mosaic.version = 11 : i64} {
  func.func @_split_model_kernel(%arg0: i32, %arg1: memref<15x11xf32, #tpu.memory_space<vmem>>, %arg2: memref<10x8xf32, #tpu.memory_space<vmem>>, %arg3: memref<5x8xf32, #tpu.memory_space<vmem>>) attributes {dimension_semantics = [#tpu.dimension_semantics<parallel>], iteration_bounds = array<i64: 1>, scalar_prefetch = 0 : i64, scratch_operands = 0 : i64, tpu.core_type = #tpu.core_type<tc>, window_params = [{pipeline_mode = #tpu.pipeline_mode<synchronous>, transform_indices = @transform_0, window_bounds = array<i64: 15, 11>}, {transform_indices = @transform_1, window_bounds = array<i64: 10, 8>}, {transform_indices = @transform_2, window_bounds = array<i64: 5, 8>}]} {
    %c0 = arith.constant 0 : index
    %c0_0 = arith.constant 0 : index
    %0 = vector.load %arg1[%c0, %c0_0] : memref<15x11xf32, #tpu.memory_space<vmem>>, vector<15x11xf32>
    %1 = vector.extract_strided_slice %0 {offsets = [0, 0], sizes = [10, 10], strides = [1, 1]} : vector<15x11xf32> to vector<10x10xf32>
    %2 = vector.extract_strided_slice %0 {offsets = [0, 10], sizes = [10, 1], strides = [1, 1]} : vector<15x11xf32> to vector<10x1xf32>
    %3 = vector.extract_strided_slice %0 {offsets = [10, 0], sizes = [5, 10], strides = [1, 1]} : vector<15x11xf32> to vector<5x10xf32>
    %4 = vector.extract_strided_slice %0 {offsets = [10, 10], sizes = [5, 1], strides = [1, 1]} : vector<15x11xf32> to vector<5x1xf32>
    %c0_1 = arith.constant 0 : index
    %c0_2 = arith.constant 0 : index
    %5 = vector.load %arg2[%c0_1, %c0_2] : memref<10x8xf32, #tpu.memory_space<vmem>>, vector<10x8xf32>
    %cst = arith.constant dense<0.000000e+00> : vector<10x8xf32>
    %6 = tpu.matmul %1, %5, %cst {dimension_numbers = #tpu.dot_dimension_numbers<[1], [0], [0], [1], [0, 0, 1, 1], [], []>} : vector<10x10xf32>, vector<10x8xf32>, vector<10x8xf32> -> vector<10x8xf32>
    %7 = vector.broadcast %2 : vector<10x1xf32> to vector<10x8xf32>
    %8 = arith.addf %6, %7 : vector<10x8xf32>
    %cst_3 = arith.constant 0.000000e+00 : f32
    %9 = vector.broadcast %cst_3 : f32 to vector<10x8xf32>
    %10 = arith.maximumf %8, %9 : vector<10x8xf32>
    %cst_4 = arith.constant dense<0.000000e+00> : vector<5x8xf32>
    %11 = tpu.matmul %3, %10, %cst_4 {dimension_numbers = #tpu.dot_dimension_numbers<[1], [0], [0], [1], [0, 0, 1, 1], [], []>} : vector<5x10xf32>, vector<10x8xf32>, vector<5x8xf32> -> vector<5x8xf32>
    %12 = vector.broadcast %4 : vector<5x1xf32> to vector<5x8xf32>
    %13 = arith.addf %11, %12 : vector<5x8xf32>
    %c0_5 = arith.constant 0 : index
    %c0_6 = arith.constant 0 : index
    %14 = vector.load %arg3[%c0_5, %c0_6] : memref<5x8xf32, #tpu.memory_space<vmem>>, vector<5x8xf32>
    tpu.vector_store %arg3[%c0_5, %c0_6], %13 {strides = array<i32>} : memref<5x8xf32, #tpu.memory_space<vmem>>, vector<5x8xf32>,
    return
  }
  func.func @transform_0(%arg0: i32) -> (i32, i32) {
    %c0_i32 = arith.constant 0 : i32
    %c0_i32_0 = arith.constant 0 : i32
    %c0_i32_1 = arith.constant 0 : i32
    return %c0_i32, %c0_i32_0 : i32, i32
  }
  func.func @transform_1(%arg0: i32) -> (i32, i32) {
    %c0_i32 = arith.constant 0 : i32
    %c0_i32_0 = arith.constant 0 : i32
    return %c0_i32, %arg0 : i32, i32
  }
  func.func @transform_2(%arg0: i32) -> (i32, i32) {
    %c0_i32 = arith.constant 0 : i32
    %c0_i32_0 = arith.constant 0 : i32
    return %c0_i32, %arg0 : i32, i32
  }
}

</mosaic_0001>

<bundles_post_ra>
// kernel: tpu_custom_call.1
= control target key start
LH: loop header
LB: loop body
LE: loop exit
PB: predicated region body
PF: predicated region fallthrough
CT: control target
= control target key end

     0   :  { %vm31_vm0 = vcmask 1041408   ;;  %vm26_vm1 = vcmask 80896   ;;  %s180_s0 = inlined_call_operand.vmem [shape: f32[15,11], index: 0, kind: input, shape index: {}]   ;;  %s181_s1 = inlined_call_operand.vmem [shape: f32[10,8], index: 1, kind: input, shape index: {}]   ;;  %s182_s2 = inlined_call_operand.hbm [shape: f32[5,8], index: 2, kind: output, shape index: {}]  }
   0x1   :  { %v15_v0 = vld [vmem:[%s181_s1 + $0x8] sm:$0x3]  ;;  %v14_v1 = vld [vmem:[%s181_s1] sm:$0xff] }
   0x2   :  { %v12_v2 = vld [vmem:[%s180_s0] sm:$0xff]  ;;  %106 = vmatpush.msk.msra.mxu0 %vm31_vm0, %v15_v0  ;;  %111 = vmatpush.msk.msra.mxu2 %vm31_vm0, %v15_v0  ;;  %v13_v3 = vld [vmem:[%s180_s0 + $0x8] sm:$0x7f] }
   0x3   :  { %7 = vsyncpa [#allocation3], 0  ;;  %v142_v4 = vmov 10   ;;  %v60_v12 = vrot.slane %v13_v3, 2  ;;  %s143_s0 = smov [#allocation2]   ;;  %s97_s19 = sshll.u32 %s182_s2, 4  ;;  %s98_s19 = int_to_ptr.hbm [resolvable:$true] %s97_s19 }
   0x4   :  { %115 = vset.pattern.permute.xlu0 %v142_v4  ;;  %50 = vmatpush.msra.mxu0 %v14_v1  ;;  %s95_s1 = sshll.u32 %s143_s0, 4  ;;  %vm88_vm2 = vcmask 61440   ;;  %s96_s1 = int_to_ptr.vmem [resolvable:$true] %s95_s1 }
   0x5   :  { %112 = vmatpush.msra.mxu2 %v14_v1  ;;  %107 = vmatmul.msk.f32.vlgmr.msra.gmra.mxu0 %vm26_vm1, %v12_v2 }
   0x6   :  { %108 = vmatmul.msk.f32.vlgmr.msra.gmra.mxu2 %vm26_vm1, %v13_v3  ;;  %23 = vperm.xlu0 %115, %v13_v3  }
   0xe   :  { %18 = vperm.xlu0 %115, %v12_v2  }
  0x78   :  { %v24_v5 = vpop.permute.xlu0 %23 }
  0x79   :  { %v61_v14 = vrot.slane %v24_v5, 2 }
  0x80   :  { %v19_v6 = vpop.permute.xlu0 %18 }
  0x82   :  { %v52_v7 = vpop.f32.mrf.mxu0 }
  0x83   :  { %v53_v9 = vadd.f32 %v52_v7, %v19_v6 }
  0x85   :  { %v58_v13 = vmax.f32 %v53_v9, 0.0 }
  0x89   :  { %v55_v8 = vpop.f32.mrf.mxu2 }
  0x8a   :  { %v56_v10 = vadd.f32 %v55_v8, %v24_v5 }
  0x8c   :  { %v59_v11 = vmax.f32 %v56_v10, 0.0 }
  0x8e   :  { %109 = vmatpush.msk.msra.mxu1 %vm31_vm0, %v59_v11 }
  0x90   :  { %83 = vmatpush.msra.mxu1 %v58_v13 }
  0x91   :  { %110 = vmatmul.msk.f32.vlgmr.msra.gmra.mxu1 %vm26_vm1, %v60_v12 }
 0x10e   :  { %v85_v15 = vpop.f32.mrf.mxu1 }
 0x10f   :  { %v86_v16 = vadd.f32 %v85_v15, %v61_v14 }
 0x111   :  { %89 = vst.msk [vmem:[#allocation2] sm:$0x1f] %vm88_vm2, %v86_v16 }
 0x112   :  { %100 = dma.vmem_to_hbm [thread:$0]  %s96_s1, 128, %s98_s19, [#allocation3]  }
 0x113   :  { %140 = dma.done.wait [#allocation3], 128  }
 0x114   :  { %141 = vsyncadd [#allocation3], 4294967168 }
 0x115   :  { %105 = vsyncpa [#allocation3], 1 }

</bundles_post_ra>
